<compile_context>
chip_gen: v7x
topology: tpu7x:2x2x1
jax: 0.10.0
libtpu: 0.0.40
codegen_flags: <defaults>
</compile_context>

<pallas_src>
import math
import numpy as np
import jax
import jax.numpy as jnp
from jax.experimental import pallas as pl
from jax.experimental.pallas import tpu as pltpu

# ----------------------------- configuration --------------------------------
TEXT_DIM   = 32          # text_embedding_dim
HIDDEN     = 32          # hidden_dim
NUM_HEADS  = 4
NUM_LAYERS = 2
MLP_HIDDEN = int(HIDDEN * 4.0)
LORA_RANK  = 4
LN_EPS     = 1e-5
BATCH      = 2
SEQ_LEN    = 1           # HyperNetwork unsqueezes to a length-1 sequence; kernel relies on this.

# lora_config: layer_name -> (in_features, out_features)
LORA_CONFIG = {"attn_q": (16, 32), "attn_v": (32, 16)}


def calc_param_specs(lora_config, rank):
    specs = {}
    for name, (fin, fout) in lora_config.items():
        a = fin * rank
        b = rank * fout
        specs[name] = {"in_features": fin, "out_features": fout,
                       "lora_A_params": a, "lora_B_params": b,
                       "total_params": a + b}
    return specs


PARAM_SPECS  = calc_param_specs(LORA_CONFIG, LORA_RANK)
TOTAL_PARAMS = sum(s["total_params"] for s in PARAM_SPECS.values())   # 384 here


# ----------------------------- parameter init -------------------------------
def xavier_uniform(key, fan_in, fan_out):
    bound = math.sqrt(6.0 / (fan_in + fan_out))
    return jax.random.uniform(key, (fan_in, fan_out), jnp.float32, -bound, bound)


def init_params(key):
    keys = iter(jax.random.split(key, 64))
    p = {}
    # HyperNetwork.input_proj
    p["in_w"] = xavier_uniform(next(keys), TEXT_DIM, HIDDEN)
    p["in_b"] = jnp.zeros((1, HIDDEN), jnp.float32)
    # positional encoding (torch: randn(1,1,H) * 0.02) — kept as (1, H) since seq len is 1
    p["pos"] = jax.random.normal(next(keys), (1, HIDDEN), jnp.float32) * 0.02

    ln1_w, ln1_b, qkv_w, qkv_b, ow, ob = [], [], [], [], [], []
    ln2_w, ln2_b, m1_w, m1_b, m2_w, m2_b = [], [], [], [], [], []
    for _ in range(NUM_LAYERS):
        ln1_w.append(jnp.ones((1, HIDDEN), jnp.float32))
        ln1_b.append(jnp.zeros((1, HIDDEN), jnp.float32))
        qkv_w.append(xavier_uniform(next(keys), HIDDEN, 3 * HIDDEN))
        qkv_b.append(jnp.zeros((1, 3 * HIDDEN), jnp.float32))
        ow.append(xavier_uniform(next(keys), HIDDEN, HIDDEN))
        ob.append(jnp.zeros((1, HIDDEN), jnp.float32))
        ln2_w.append(jnp.ones((1, HIDDEN), jnp.float32))
        ln2_b.append(jnp.zeros((1, HIDDEN), jnp.float32))
        m1_w.append(xavier_uniform(next(keys), HIDDEN, MLP_HIDDEN))
        m1_b.append(jnp.zeros((1, MLP_HIDDEN), jnp.float32))
        m2_w.append(xavier_uniform(next(keys), MLP_HIDDEN, HIDDEN))
        m2_b.append(jnp.zeros((1, HIDDEN), jnp.float32))

    stack = lambda xs: jnp.stack(xs, axis=0)
    p.update(ln1_w=stack(ln1_w), ln1_b=stack(ln1_b),
             qkv_w=stack(qkv_w), qkv_b=stack(qkv_b),
             ow=stack(ow), ob=stack(ob),
             ln2_w=stack(ln2_w), ln2_b=stack(ln2_b),
             m1_w=stack(m1_w), m1_b=stack(m1_b),
             m2_w=stack(m2_w), m2_b=stack(m2_b))

    # final LayerNorm
    p["lnf_w"] = jnp.ones((1, HIDDEN), jnp.float32)
    p["lnf_b"] = jnp.zeros((1, HIDDEN), jnp.float32)
    # output_proj  (HIDDEN -> TOTAL_PARAMS)
    p["op_w"] = xavier_uniform(next(keys), HIDDEN, TOTAL_PARAMS)
    p["op_b"] = jnp.zeros((1, TOTAL_PARAMS), jnp.float32)
    return p


# -------------------- one-time param prep (hoisted out of forward) ----------
def prepare_fused_params(p):
    """Fold LN affines into the following projections, fuse V-proj@out-proj, pack biases.

    Pure algebra at inference:
      (norm*w + b) @ W   ==  norm @ (diag(w) W) + (b @ W)
      softmax(1x1) == 1  =>  attention out == v @ W_o  (q/k columns are dead)
    """
    assert SEQ_LEN == 1 and p["pos"].shape == (1, HIDDEN), \
        "q/k elision and the attn fusion assume a length-1 sequence"
    hp = jax.lax.Precision.HIGHEST

    # --- attention branch: fold ln1 affine into W_v, fuse with out_proj ---
    v_w = p["qkv_w"][:, :, 2 * HIDDEN:]                     # (L, H, H)   only V columns live
    v_b = p["qkv_b"][:, :, 2 * HIDDEN:]                     # (L, 1, H)
    v_w_f = p["ln1_w"].transpose(0, 2, 1) * v_w             # diag(ln1_w) @ W_v
    v_b_f = jnp.einsum("lij,ljk->lik", p["ln1_b"], v_w, precision=hp) + v_b
    w_attn = jnp.einsum("lij,ljk->lik", v_w_f, p["ow"], precision=hp)          # (L, H, H)
    b_attn = jnp.einsum("lij,ljk->lik", v_b_f, p["ow"], precision=hp) + p["ob"]  # (L, 1, H)

    # --- MLP branch: fold ln2 affine into fc1 (GELU blocks further fusion) ---
    w_m1 = p["ln2_w"].transpose(0, 2, 1) * p["m1_w"]                            # (L, H, MLP)
    b_m1 = (jnp.einsum("lij,ljk->lik", p["ln2_b"], p["m1_w"], precision=hp)
            + p["m1_b"])[:, 0, :]                                               # (L, MLP)
    w_m2 = p["m2_w"]                                                            # (L, MLP, H)
    b_m2 = p["m2_b"][:, 0, :]                                                   # (L, H)

    # --- final LN folded into output projection ---
    w_op = p["lnf_w"].T * p["op_w"]                                             # (H, TOTAL)
    b_op = jnp.dot(p["lnf_b"], p["op_w"], precision=hp) + p["op_b"]             # (1, TOTAL)

    # --- input proj bias + positional encoding combined ---
    b_in = p["in_b"] + p["pos"]                                                 # (1, H)

    # pack all H-wide biases into one slab: row 0 = b_in, rows 1..L = b_attn, rows 1+L..2L = b_m2
    bias_h = jnp.concatenate([b_in, b_attn[:, 0, :], b_m2], axis=0)             # (1+2L, H)

    return dict(in_w=p["in_w"], attn_w=w_attn, m1_w=w_m1, m2_w=w_m2, op_w=w_op,
                bias_h=bias_h, m1_b=b_m1, op_b=b_op)


# ------------------------------ Pallas kernel --------------------------------
def _normalize(x):
    # LayerNorm without affine (affine is pre-folded into the following weights)
    mu  = jnp.mean(x, axis=-1, keepdims=True)
    var = jnp.mean((x - mu) * (x - mu), axis=-1, keepdims=True)
    return (x - mu) * jax.lax.rsqrt(var + LN_EPS)


def _gelu_exact(x):
    # matches torch.nn.GELU() (erf-based, non-approximate)
    return 0.5 * x * (1.0 + jax.lax.erf(x * (1.0 / math.sqrt(2.0))))


def hypernet_kernel(x_ref, in_w_ref, attn_w_ref, m1_w_ref, m2_w_ref, op_w_ref,
                    bias_h_ref, m1_b_ref, op_b_ref, out_ref):
    """Fused trunk + output projection; 9 whole-array VMEM operands, no grid."""
    x = (jnp.dot(x_ref[...], in_w_ref[...], preferred_element_type=jnp.float32)
         + bias_h_ref[0:1, :])                                         # (B, H); b_in + pos

    for l in range(NUM_LAYERS):                                        # unrolled, static trip count
        # attention branch (dropout identity; seq_len==1 => softmax==1; LN affine + V@O folded)
        n = _normalize(x)
        x = x + (jnp.dot(n, attn_w_ref[l], preferred_element_type=jnp.float32)
                 + bias_h_ref[1 + l:2 + l, :])
        # MLP branch (LN affine folded into fc1)
        n = _normalize(x)
        h = (jnp.dot(n, m1_w_ref[l], preferred_element_type=jnp.float32)
             + m1_b_ref[l:l + 1, :])
        h = _gelu_exact(h)
        x = x + (jnp.dot(h, m2_w_ref[l], preferred_element_type=jnp.float32)
                 + bias_h_ref[1 + NUM_LAYERS + l:2 + NUM_LAYERS + l, :])

    # final LN (affine folded into op_w) + output projection — the only HBM write
    n = _normalize(x)
    out_ref[...] = (jnp.dot(n, op_w_ref[...], preferred_element_type=jnp.float32)
                    + op_b_ref[...])


# ------------------------------ wrapper --------------------------------------
@jax.jit
def hypernet_forward(text_embeddings, fused):
    B = text_embeddings.shape[0]

    flops = 2 * B * (TEXT_DIM * HIDDEN
                     + NUM_LAYERS * (HIDDEN * HIDDEN + 2 * HIDDEN * MLP_HIDDEN)
                     + HIDDEN * TOTAL_PARAMS)
    transcendentals = B * (NUM_LAYERS * MLP_HIDDEN + 2 * NUM_LAYERS + 1)
    bytes_accessed = 4 * (text_embeddings.size
                          + sum(int(np.prod(v.shape)) for v in fused.values())
                          + B * TOTAL_PARAMS)

    vmem = pl.BlockSpec(memory_space=pltpu.MemorySpace.VMEM)
    return pl.pallas_call(
        hypernet_kernel,
        out_shape=jax.ShapeDtypeStruct((B, TOTAL_PARAMS), jnp.float32),
        in_specs=[vmem] * 9,
        out_specs=vmem,
        cost_estimate=pl.CostEstimate(flops=flops,
                                      transcendentals=transcendentals,
                                      bytes_accessed=bytes_accessed),
    )(text_embeddings, fused["in_w"], fused["attn_w"], fused["m1_w"], fused["m2_w"],
      fused["op_w"], fused["bias_h"], fused["m1_b"], fused["op_b"])


def reshape_lora_params(flat):
    """Plain-JAX glue: slice the flat vector into per-layer LoRA A/B matrices."""
    B = flat.shape[0]
    out, idx = {}, 0
    for name, spec in PARAM_SPECS.items():
        a_end = idx + spec["lora_A_params"]
        out[f"{name}.lora_A"] = flat[:, idx:a_end].reshape(B, spec["in_features"], LORA_RANK)
        idx = a_end
        b_end = idx + spec["lora_B_params"]
        out[f"{name}.lora_B"] = flat[:, idx:b_end].reshape(B, LORA_RANK, spec["out_features"])
        idx = b_end
    return out


# --------------------------- pure-JAX reference ------------------------------
def _layer_norm_ref(x, w, b):
    mu  = jnp.mean(x, axis=-1, keepdims=True)
    var = jnp.mean((x - mu) * (x - mu), axis=-1, keepdims=True)
    return (x - mu) * jax.lax.rsqrt(var + LN_EPS) * w + b


def reference_forward(x, p):
    """Unfused reference following the PyTorch module (dropout identity at eval)."""
    hp = jax.lax.Precision.HIGHEST
    dot = lambda a, b: jnp.dot(a, b, precision=hp)
    h = dot(x, p["in_w"]) + p["in_b"] + p["pos"]
    for l in range(NUM_LAYERS):
        n = _layer_norm_ref(h, p["ln1_w"][l], p["ln1_b"][l])
        qkv = dot(n, p["qkv_w"][l]) + p["qkv_b"][l]
        v = qkv[:, 2 * HIDDEN:]                          # softmax over length-1 seq == 1
        h = h + (dot(v, p["ow"][l]) + p["ob"][l])
        n = _layer_norm_ref(h, p["ln2_w"][l], p["ln2_b"][l])
        n = _gelu_exact(dot(n, p["m1_w"][l]) + p["m1_b"][l])
        h = h + (dot(n, p["m2_w"][l]) + p["m2_b"][l])
    h = _layer_norm_ref(h, p["lnf_w"], p["lnf_b"])
    return dot(h, p["op_w"]) + p["op_b"]


# ---------------------------------- main --------------------------------------
if __name__ == "__main__":
    key = jax.random.PRNGKey(0)
    k_param, k_x = jax.random.split(key)
    params = init_params(k_param)

    # one-time prep: LN folding, V@O fusion, bias packing (outside the per-call path)
    fused = prepare_fused_params(params)
    fused = {k: jax.block_until_ready(v) for k, v in fused.items()}

    # stand-in for the frozen text encoder output: (B, TEXT_DIM)
    text_embeddings = jax.random.normal(k_x, (BATCH, TEXT_DIM), jnp.float32)

    flat = hypernet_forward(text_embeddings, fused)
    flat = jax.block_until_ready(flat)

    lora = reshape_lora_params(flat)
    jax.block_until_ready(lora)

    # sanity check against a pure-JAX implementation of the unfused math
    ref = reference_forward(text_embeddings, params)
    np.testing.assert_allclose(np.asarray(flat), np.asarray(ref), rtol=1e-4, atol=1e-4)

    assert flat.shape == (BATCH, TOTAL_PARAMS)
    assert lora["attn_q.lora_A"].shape == (BATCH, 16, LORA_RANK)
    assert lora["attn_q.lora_B"].shape == (BATCH, LORA_RANK, 32)
    assert lora["attn_v.lora_A"].shape == (BATCH, 32, LORA_RANK)
    assert lora["attn_v.lora_B"].shape == (BATCH, LORA_RANK, 16)

    print("KERNEL_OK")
</pallas_src>

<mosaic_0001>
module attributes {stable_mosaic.version = 11 : i64} {
  func.func @hypernet_kernel(%arg0: memref<2x32xf32, #tpu.memory_space<vmem>>, %arg1: memref<32x32xf32, #tpu.memory_space<vmem>>, %arg2: memref<2x32x32xf32, #tpu.memory_space<vmem>>, %arg3: memref<2x32x128xf32, #tpu.memory_space<vmem>>, %arg4: memref<2x128x32xf32, #tpu.memory_space<vmem>>, %arg5: memref<32x384xf32, #tpu.memory_space<vmem>>, %arg6: memref<5x32xf32, #tpu.memory_space<vmem>>, %arg7: memref<2x128xf32, #tpu.memory_space<vmem>>, %arg8: memref<1x384xf32, #tpu.memory_space<vmem>>, %arg9: memref<2x384xf32, #tpu.memory_space<vmem>>) attributes {dimension_semantics = [], scalar_prefetch = 0 : i64, scratch_operands = 0 : i64, tpu.core_type = #tpu.core_type<tc>} {
    %c0 = arith.constant 0 : index
    %c0_0 = arith.constant 0 : index
    %0 = vector.load %arg0[%c0, %c0_0] : memref<2x32xf32, #tpu.memory_space<vmem>>, vector<2x32xf32>
    %c0_1 = arith.constant 0 : index
    %c0_2 = arith.constant 0 : index
    %1 = vector.load %arg1[%c0_1, %c0_2] : memref<32x32xf32, #tpu.memory_space<vmem>>, vector<32x32xf32>
    %cst = arith.constant dense<0.000000e+00> : vector<2x32xf32>
    %2 = tpu.matmul %0, %1, %cst {dimension_numbers = #tpu.dot_dimension_numbers<[1], [0], [0], [1], [0, 0, 1, 1], [], []>} : vector<2x32xf32>, vector<32x32xf32>, vector<2x32xf32> -> vector<2x32xf32>
    %c0_3 = arith.constant 0 : index
    %c0_4 = arith.constant 0 : index
    %3 = vector.load %arg6[%c0_3, %c0_4] : memref<5x32xf32, #tpu.memory_space<vmem>>, vector<1x32xf32>
    %4 = vector.broadcast %3 : vector<1x32xf32> to vector<2x32xf32>
    %5 = arith.addf %2, %4 : vector<2x32xf32>
    %cst_5 = arith.constant dense<0.000000e+00> : vector<2xf32>
    %6 = vector.multi_reduction <add>, %5, %cst_5 [1] : vector<2x32xf32> to vector<2xf32>
    %7 = vector.shape_cast %6 : vector<2xf32> to vector<2x1xf32>
    %cst_6 = arith.constant 3.200000e+01 : f32
    %8 = vector.broadcast %cst_6 : f32 to vector<2x1xf32>
    %9 = arith.divf %7, %8 : vector<2x1xf32>
    %10 = vector.broadcast %9 : vector<2x1xf32> to vector<2x32xf32>
    %11 = arith.subf %5, %10 : vector<2x32xf32>
    %12 = vector.broadcast %9 : vector<2x1xf32> to vector<2x32xf32>
    %13 = arith.subf %5, %12 : vector<2x32xf32>
    %14 = arith.mulf %11, %13 : vector<2x32xf32>
    %cst_7 = arith.constant dense<0.000000e+00> : vector<2xf32>
    %15 = vector.multi_reduction <add>, %14, %cst_7 [1] : vector<2x32xf32> to vector<2xf32>
    %16 = vector.shape_cast %15 : vector<2xf32> to vector<2x1xf32>
    %cst_8 = arith.constant 3.200000e+01 : f32
    %17 = vector.broadcast %cst_8 : f32 to vector<2x1xf32>
    %18 = arith.divf %16, %17 : vector<2x1xf32>
    %19 = vector.broadcast %9 : vector<2x1xf32> to vector<2x32xf32>
    %20 = arith.subf %5, %19 : vector<2x32xf32>
    %cst_9 = arith.constant 9.99999974E-6 : f32
    %21 = vector.broadcast %cst_9 : f32 to vector<2x1xf32>
    %22 = arith.addf %18, %21 : vector<2x1xf32>
    %23 = math.rsqrt %22 : vector<2x1xf32>
    %24 = vector.broadcast %23 : vector<2x1xf32> to vector<2x32xf32>
    %25 = arith.mulf %20, %24 : vector<2x32xf32>
    %c0_10 = arith.constant 0 : index
    %c0_11 = arith.constant 0 : index
    %c0_12 = arith.constant 0 : index
    %26 = vector.load %arg2[%c0_10, %c0_11, %c0_12] : memref<2x32x32xf32, #tpu.memory_space<vmem>>, vector<1x32x32xf32>
    %27 = vector.shape_cast %26 : vector<1x32x32xf32> to vector<32x32xf32>
    %cst_13 = arith.constant dense<0.000000e+00> : vector<2x32xf32>
    %28 = tpu.matmul %25, %27, %cst_13 {dimension_numbers = #tpu.dot_dimension_numbers<[1], [0], [0], [1], [0, 0, 1, 1], [], []>} : vector<2x32xf32>, vector<32x32xf32>, vector<2x32xf32> -> vector<2x32xf32>
    %c1 = arith.constant 1 : index
    %c0_14 = arith.constant 0 : index
    %29 = vector.load %arg6[%c1, %c0_14] : memref<5x32xf32, #tpu.memory_space<vmem>>, vector<1x32xf32>
    %30 = vector.broadcast %29 : vector<1x32xf32> to vector<2x32xf32>
    %31 = arith.addf %28, %30 : vector<2x32xf32>
    %32 = arith.addf %5, %31 : vector<2x32xf32>
    %cst_15 = arith.constant dense<0.000000e+00> : vector<2xf32>
    %33 = vector.multi_reduction <add>, %32, %cst_15 [1] : vector<2x32xf32> to vector<2xf32>
    %34 = vector.shape_cast %33 : vector<2xf32> to vector<2x1xf32>
    %cst_16 = arith.constant 3.200000e+01 : f32
    %35 = vector.broadcast %cst_16 : f32 to vector<2x1xf32>
    %36 = arith.divf %34, %35 : vector<2x1xf32>
    %37 = vector.broadcast %36 : vector<2x1xf32> to vector<2x32xf32>
    %38 = arith.subf %32, %37 : vector<2x32xf32>
    %39 = vector.broadcast %36 : vector<2x1xf32> to vector<2x32xf32>
    %40 = arith.subf %32, %39 : vector<2x32xf32>
    %41 = arith.mulf %38, %40 : vector<2x32xf32>
    %cst_17 = arith.constant dense<0.000000e+00> : vector<2xf32>
    %42 = vector.multi_reduction <add>, %41, %cst_17 [1] : vector<2x32xf32> to vector<2xf32>
    %43 = vector.shape_cast %42 : vector<2xf32> to vector<2x1xf32>
    %cst_18 = arith.constant 3.200000e+01 : f32
    %44 = vector.broadcast %cst_18 : f32 to vector<2x1xf32>
    %45 = arith.divf %43, %44 : vector<2x1xf32>
    %46 = vector.broadcast %36 : vector<2x1xf32> to vector<2x32xf32>
    %47 = arith.subf %32, %46 : vector<2x32xf32>
    %cst_19 = arith.constant 9.99999974E-6 : f32
    %48 = vector.broadcast %cst_19 : f32 to vector<2x1xf32>
    %49 = arith.addf %45, %48 : vector<2x1xf32>
    %50 = math.rsqrt %49 : vector<2x1xf32>
    %51 = vector.broadcast %50 : vector<2x1xf32> to vector<2x32xf32>
    %52 = arith.mulf %47, %51 : vector<2x32xf32>
    %c0_20 = arith.constant 0 : index
    %c0_21 = arith.constant 0 : index
    %c0_22 = arith.constant 0 : index
    %53 = vector.load %arg3[%c0_20, %c0_21, %c0_22] : memref<2x32x128xf32, #tpu.memory_space<vmem>>, vector<1x32x128xf32>
    %54 = vector.shape_cast %53 : vector<1x32x128xf32> to vector<32x128xf32>
    %cst_23 = arith.constant dense<0.000000e+00> : vector<2x128xf32>
    %55 = tpu.matmul %52, %54, %cst_23 {dimension_numbers = #tpu.dot_dimension_numbers<[1], [0], [0], [1], [0, 0, 1, 1], [], []>} : vector<2x32xf32>, vector<32x128xf32>, vector<2x128xf32> -> vector<2x128xf32>
    %c0_24 = arith.constant 0 : index
    %c0_25 = arith.constant 0 : index
    %56 = vector.load %arg7[%c0_24, %c0_25] : memref<2x128xf32, #tpu.memory_space<vmem>>, vector<1x128xf32>
    %57 = vector.broadcast %56 : vector<1x128xf32> to vector<2x128xf32>
    %58 = arith.addf %55, %57 : vector<2x128xf32>
    %cst_26 = arith.constant 5.000000e-01 : f32
    %59 = vector.broadcast %cst_26 : f32 to vector<2x128xf32>
    %60 = arith.mulf %59, %58 : vector<2x128xf32>
    %cst_27 = arith.constant 0.707106769 : f32
    %61 = vector.broadcast %cst_27 : f32 to vector<2x128xf32>
    %62 = arith.mulf %58, %61 : vector<2x128xf32>
    %63 = math.erf %62 : vector<2x128xf32>
    %cst_28 = arith.constant 1.000000e+00 : f32
    %64 = vector.broadcast %cst_28 : f32 to vector<2x128xf32>
    %65 = arith.addf %64, %63 : vector<2x128xf32>
    %66 = arith.mulf %60, %65 : vector<2x128xf32>
    %c0_29 = arith.constant 0 : index
    %c0_30 = arith.constant 0 : index
    %c0_31 = arith.constant 0 : index
    %67 = vector.load %arg4[%c0_29, %c0_30, %c0_31] : memref<2x128x32xf32, #tpu.memory_space<vmem>>, vector<1x128x32xf32>
    %68 = vector.shape_cast %67 : vector<1x128x32xf32> to vector<128x32xf32>
    %cst_32 = arith.constant dense<0.000000e+00> : vector<2x32xf32>
    %69 = tpu.matmul %66, %68, %cst_32 {dimension_numbers = #tpu.dot_dimension_numbers<[1], [0], [0], [1], [0, 0, 1, 1], [], []>} : vector<2x128xf32>, vector<128x32xf32>, vector<2x32xf32> -> vector<2x32xf32>
    %c3 = arith.constant 3 : index
    %c0_33 = arith.constant 0 : index
    %70 = vector.load %arg6[%c3, %c0_33] : memref<5x32xf32, #tpu.memory_space<vmem>>, vector<1x32xf32>
    %71 = vector.broadcast %70 : vector<1x32xf32> to vector<2x32xf32>
    %72 = arith.addf %69, %71 : vector<2x32xf32>
    %73 = arith.addf %32, %72 : vector<2x32xf32>
    %cst_34 = arith.constant dense<0.000000e+00> : vector<2xf32>
    %74 = vector.multi_reduction <add>, %73, %cst_34 [1] : vector<2x32xf32> to vector<2xf32>
    %75 = vector.shape_cast %74 : vector<2xf32> to vector<2x1xf32>
    %cst_35 = arith.constant 3.200000e+01 : f32
    %76 = vector.broadcast %cst_35 : f32 to vector<2x1xf32>
    %77 = arith.divf %75, %76 : vector<2x1xf32>
    %78 = vector.broadcast %77 : vector<2x1xf32> to vector<2x32xf32>
    %79 = arith.subf %73, %78 : vector<2x32xf32>
    %80 = vector.broadcast %77 : vector<2x1xf32> to vector<2x32xf32>
    %81 = arith.subf %73, %80 : vector<2x32xf32>
    %82 = arith.mulf %79, %81 : vector<2x32xf32>
    %cst_36 = arith.constant dense<0.000000e+00> : vector<2xf32>
    %83 = vector.multi_reduction <add>, %82, %cst_36 [1] : vector<2x32xf32> to vector<2xf32>
    %84 = vector.shape_cast %83 : vector<2xf32> to vector<2x1xf32>
    %cst_37 = arith.constant 3.200000e+01 : f32
    %85 = vector.broadcast %cst_37 : f32 to vector<2x1xf32>
    %86 = arith.divf %84, %85 : vector<2x1xf32>
    %87 = vector.broadcast %77 : vector<2x1xf32> to vector<2x32xf32>
    %88 = arith.subf %73, %87 : vector<2x32xf32>
    %cst_38 = arith.constant 9.99999974E-6 : f32
    %89 = vector.broadcast %cst_38 : f32 to vector<2x1xf32>
    %90 = arith.addf %86, %89 : vector<2x1xf32>
    %91 = math.rsqrt %90 : vector<2x1xf32>
    %92 = vector.broadcast %91 : vector<2x1xf32> to vector<2x32xf32>
    %93 = arith.mulf %88, %92 : vector<2x32xf32>
    %c1_39 = arith.constant 1 : index
    %c0_40 = arith.constant 0 : index
    %c0_41 = arith.constant 0 : index
    %94 = vector.load %arg2[%c1_39, %c0_40, %c0_41] : memref<2x32x32xf32, #tpu.memory_space<vmem>>, vector<1x32x32xf32>
    %95 = vector.shape_cast %94 : vector<1x32x32xf32> to vector<32x32xf32>
    %cst_42 = arith.constant dense<0.000000e+00> : vector<2x32xf32>
    %96 = tpu.matmul %93, %95, %cst_42 {dimension_numbers = #tpu.dot_dimension_numbers<[1], [0], [0], [1], [0, 0, 1, 1], [], []>} : vector<2x32xf32>, vector<32x32xf32>, vector<2x32xf32> -> vector<2x32xf32>
    %c2 = arith.constant 2 : index
    %c0_43 = arith.constant 0 : index
    %97 = vector.load %arg6[%c2, %c0_43] : memref<5x32xf32, #tpu.memory_space<vmem>>, vector<1x32xf32>
    %98 = vector.broadcast %97 : vector<1x32xf32> to vector<2x32xf32>
    %99 = arith.addf %96, %98 : vector<2x32xf32>
    %100 = arith.addf %73, %99 : vector<2x32xf32>
    %cst_44 = arith.constant dense<0.000000e+00> : vector<2xf32>
    %101 = vector.multi_reduction <add>, %100, %cst_44 [1] : vector<2x32xf32> to vector<2xf32>
    %102 = vector.shape_cast %101 : vector<2xf32> to vector<2x1xf32>
    %cst_45 = arith.constant 3.200000e+01 : f32
    %103 = vector.broadcast %cst_45 : f32 to vector<2x1xf32>
    %104 = arith.divf %102, %103 : vector<2x1xf32>
    %105 = vector.broadcast %104 : vector<2x1xf32> to vector<2x32xf32>
    %106 = arith.subf %100, %105 : vector<2x32xf32>
    %107 = vector.broadcast %104 : vector<2x1xf32> to vector<2x32xf32>
    %108 = arith.subf %100, %107 : vector<2x32xf32>
    %109 = arith.mulf %106, %108 : vector<2x32xf32>
    %cst_46 = arith.constant dense<0.000000e+00> : vector<2xf32>
    %110 = vector.multi_reduction <add>, %109, %cst_46 [1] : vector<2x32xf32> to vector<2xf32>
    %111 = vector.shape_cast %110 : vector<2xf32> to vector<2x1xf32>
    %cst_47 = arith.constant 3.200000e+01 : f32
    %112 = vector.broadcast %cst_47 : f32 to vector<2x1xf32>
    %113 = arith.divf %111, %112 : vector<2x1xf32>
    %114 = vector.broadcast %104 : vector<2x1xf32> to vector<2x32xf32>
    %115 = arith.subf %100, %114 : vector<2x32xf32>
    %cst_48 = arith.constant 9.99999974E-6 : f32
    %116 = vector.broadcast %cst_48 : f32 to vector<2x1xf32>
    %117 = arith.addf %113, %116 : vector<2x1xf32>
    %118 = math.rsqrt %117 : vector<2x1xf32>
    %119 = vector.broadcast %118 : vector<2x1xf32> to vector<2x32xf32>
    %120 = arith.mulf %115, %119 : vector<2x32xf32>
    %c1_49 = arith.constant 1 : index
    %c0_50 = arith.constant 0 : index
    %c0_51 = arith.constant 0 : index
    %121 = vector.load %arg3[%c1_49, %c0_50, %c0_51] : memref<2x32x128xf32, #tpu.memory_space<vmem>>, vector<1x32x128xf32>
    %122 = vector.shape_cast %121 : vector<1x32x128xf32> to vector<32x128xf32>
    %cst_52 = arith.constant dense<0.000000e+00> : vector<2x128xf32>
    %123 = tpu.matmul %120, %122, %cst_52 {dimension_numbers = #tpu.dot_dimension_numbers<[1], [0], [0], [1], [0, 0, 1, 1], [], []>} : vector<2x32xf32>, vector<32x128xf32>, vector<2x128xf32> -> vector<2x128xf32>
    %c1_53 = arith.constant 1 : index
    %c0_54 = arith.constant 0 : index
    %124 = vector.load %arg7[%c1_53, %c0_54] : memref<2x128xf32, #tpu.memory_space<vmem>>, vector<1x128xf32>
    %125 = vector.broadcast %124 : vector<1x128xf32> to vector<2x128xf32>
    %126 = arith.addf %123, %125 : vector<2x128xf32>
    %cst_55 = arith.constant 5.000000e-01 : f32
    %127 = vector.broadcast %cst_55 : f32 to vector<2x128xf32>
    %128 = arith.mulf %127, %126 : vector<2x128xf32>
    %cst_56 = arith.constant 0.707106769 : f32
    %129 = vector.broadcast %cst_56 : f32 to vector<2x128xf32>
    %130 = arith.mulf %126, %129 : vector<2x128xf32>
    %131 = math.erf %130 : vector<2x128xf32>
    %cst_57 = arith.constant 1.000000e+00 : f32
    %132 = vector.broadcast %cst_57 : f32 to vector<2x128xf32>
    %133 = arith.addf %132, %131 : vector<2x128xf32>
    %134 = arith.mulf %128, %133 : vector<2x128xf32>
    %c1_58 = arith.constant 1 : index
    %c0_59 = arith.constant 0 : index
    %c0_60 = arith.constant 0 : index
    %135 = vector.load %arg4[%c1_58, %c0_59, %c0_60] : memref<2x128x32xf32, #tpu.memory_space<vmem>>, vector<1x128x32xf32>
    %136 = vector.shape_cast %135 : vector<1x128x32xf32> to vector<128x32xf32>
    %cst_61 = arith.constant dense<0.000000e+00> : vector<2x32xf32>
    %137 = tpu.matmul %134, %136, %cst_61 {dimension_numbers = #tpu.dot_dimension_numbers<[1], [0], [0], [1], [0, 0, 1, 1], [], []>} : vector<2x128xf32>, vector<128x32xf32>, vector<2x32xf32> -> vector<2x32xf32>
    %c4 = arith.constant 4 : index
    %c0_62 = arith.constant 0 : index
    %138 = vector.load %arg6[%c4, %c0_62] : memref<5x32xf32, #tpu.memory_space<vmem>>, vector<1x32xf32>
    %139 = vector.broadcast %138 : vector<1x32xf32> to vector<2x32xf32>
    %140 = arith.addf %137, %139 : vector<2x32xf32>
    %141 = arith.addf %100, %140 : vector<2x32xf32>
    %cst_63 = arith.constant dense<0.000000e+00> : vector<2xf32>
    %142 = vector.multi_reduction <add>, %141, %cst_63 [1] : vector<2x32xf32> to vector<2xf32>
    %143 = vector.shape_cast %142 : vector<2xf32> to vector<2x1xf32>
    %cst_64 = arith.constant 3.200000e+01 : f32
    %144 = vector.broadcast %cst_64 : f32 to vector<2x1xf32>
    %145 = arith.divf %143, %144 : vector<2x1xf32>
    %146 = vector.broadcast %145 : vector<2x1xf32> to vector<2x32xf32>
    %147 = arith.subf %141, %146 : vector<2x32xf32>
    %148 = vector.broadcast %145 : vector<2x1xf32> to vector<2x32xf32>
    %149 = arith.subf %141, %148 : vector<2x32xf32>
    %150 = arith.mulf %147, %149 : vector<2x32xf32>
    %cst_65 = arith.constant dense<0.000000e+00> : vector<2xf32>
    %151 = vector.multi_reduction <add>, %150, %cst_65 [1] : vector<2x32xf32> to vector<2xf32>
    %152 = vector.shape_cast %151 : vector<2xf32> to vector<2x1xf32>
    %cst_66 = arith.constant 3.200000e+01 : f32
    %153 = vector.broadcast %cst_66 : f32 to vector<2x1xf32>
    %154 = arith.divf %152, %153 : vector<2x1xf32>
    %155 = vector.broadcast %145 : vector<2x1xf32> to vector<2x32xf32>
    %156 = arith.subf %141, %155 : vector<2x32xf32>
    %cst_67 = arith.constant 9.99999974E-6 : f32
    %157 = vector.broadcast %cst_67 : f32 to vector<2x1xf32>
    %158 = arith.addf %154, %157 : vector<2x1xf32>
    %159 = math.rsqrt %158 : vector<2x1xf32>
    %160 = vector.broadcast %159 : vector<2x1xf32> to vector<2x32xf32>
    %161 = arith.mulf %156, %160 : vector<2x32xf32>
    %c0_68 = arith.constant 0 : index
    %c0_69 = arith.constant 0 : index
    %162 = vector.load %arg5[%c0_68, %c0_69] : memref<32x384xf32, #tpu.memory_space<vmem>>, vector<32x384xf32>
    %cst_70 = arith.constant dense<0.000000e+00> : vector<2x384xf32>
    %163 = tpu.matmul %161, %162, %cst_70 {dimension_numbers = #tpu.dot_dimension_numbers<[1], [0], [0], [1], [0, 0, 1, 1], [], []>} : vector<2x32xf32>, vector<32x384xf32>, vector<2x384xf32> -> vector<2x384xf32>
    %c0_71 = arith.constant 0 : index
    %c0_72 = arith.constant 0 : index
    %164 = vector.load %arg8[%c0_71, %c0_72] : memref<1x384xf32, #tpu.memory_space<vmem>>, vector<1x384xf32>
    %165 = vector.broadcast %164 : vector<1x384xf32> to vector<2x384xf32>
    %166 = arith.addf %163, %165 : vector<2x384xf32>
    %c0_73 = arith.constant 0 : index
    %c0_74 = arith.constant 0 : index
    %167 = vector.load %arg9[%c0_73, %c0_74] : memref<2x384xf32, #tpu.memory_space<vmem>>, vector<2x384xf32>
    tpu.vector_store %arg9[%c0_73, %c0_74], %166 {strides = array<i32>} : memref<2x384xf32, #tpu.memory_space<vmem>>, vector<2x384xf32>,
    return
  }
}

</mosaic_0001>

<bundles_post_ra>
// kernel: hypernet_forward.1
= control target key start
LH: loop header
LB: loop body
LE: loop exit
PB: predicated region body
PF: predicated region fallthrough
CT: control target
= control target key end

     0   :  { %v1292_v3 = vmov 0.0|0.0   ;;  %vm1293_vm0 = vmmov 0   ;;  %v1294_v6 = vmov 0.0   ;;  %s1650_s0 = inlined_call_operand.vmem [shape: f32[2,32], index: 0, kind: input, shape index: {}]   ;;  %s1651_s1 = inlined_call_operand.vmem [shape: f32[32,32], index: 1, kind: input, shape index: {}]   ;;  %s1652_s2 = inlined_call_operand.vmem [shape: f32[2,32,32], index: 2, kind: input, shape index: {}]   ;;  %s1653_s3 = inlined_call_operand.vmem [shape: f32[2,32,128], index: 3, kind: input, shape index: {}]   ;;  %s1654_s4 = inlined_call_operand.vmem [shape: f32[2,128,32], index: 4, kind: input, shape index: {}]   ;;  %s1655_s5 = inlined_call_operand.vmem [shape: f32[32,384], index: 5, kind: input, shape index: {}]   ;;  %s1656_s6 = inlined_call_operand.vmem [shape: f32[5,32], index: 6, kind: input, shape index: {}]   ;;  %s1657_s7 = inlined_call_operand.vmem [shape: f32[2,128], index: 7, kind: input, shape index: {}]   ;;  %s1658_s8 = inlined_call_operand.vmem [shape: f32[1,384], index: 8, kind: input, shape index: {}]   ;;  %s1659_s9 = inlined_call_operand.hbm [shape: f32[2,384], index: 9, kind: output, shape index: {}]  }
   0x1   :  { %v34_v0 = vld [vmem:[%s1651_s1] sm:$0xff]  ;;  %v35_v1 = vld [vmem:[%s1651_s1 + $0x8] sm:$0xff]  ;;  %v36_v2 = vld [vmem:[%s1651_s1 + $0x10] sm:$0xff]  ;;  %1157 = vmatprep.subr.bf16.mxu0 %v1292_v3  ;;  %1029 = vmatprep.mubr.msk.f32.mxu0 %vm1293_vm0, %v1294_v6 }
   0x2   :  { %v1158_v4 = vpack.c.bf16 %v35_v1, %v34_v0  ;;  %v37_v5 = vld [vmem:[%s1651_s1 + $0x18] sm:$0xff]  ;;  %1163 = vmatprep.subr.bf16.mxu1 %v1292_v3  ;;  %1040 = vmatprep.mubr.msk.f32.mxu1 %vm1293_vm0, %v1294_v6 }
   0x3   :  { %14 = vsyncpa [#allocation3], 0  ;;  %v1161_v7 = vpack.c.bf16 %v37_v5, %v36_v2  ;;  %v33_v8 = vld [vmem:[%s1650_s0] sm:$0x3]  ;;  %vm43_vm1 = vcmask 261120   ;;  %vm117_vm2 = vcmask 254976  }
   0x4   :  { %1159 = vmatpush3.bf16.msra.mxu0 %v1158_v4  ;;  %v919_v9 = vld [vmem:[%s1656_s6] ss:$0 sm:$0xff]  ;;  %v133_v20 = vld [vmem:[%s1652_s2 + $0x8] sm:$0xff]  ;;  %v134_v21 = vld [vmem:[%s1652_s2 + $0x10] sm:$0xff] }
   0x5   :  { %1160 = vmatprep.subr.bf16.mxu0 %v1292_v3  ;;  %v132_v19 = vld [vmem:[%s1652_s2] sm:$0xff]  ;;  %v135_v23 = vld [vmem:[%s1652_s2 + $0x18] sm:$0xff]  ;;  %v229_v42 = vld [vmem:[%s1653_s3 + $0x8] sm:$0xff] }
   0x6   :  { %v1164_v22 = vpack.c.bf16 %v133_v20, %v132_v19  ;;  %v1167_v24 = vpack.c.bf16 %v135_v23, %v134_v21  ;;  %v921_v30 = vld [vmem:[%s1656_s6 + $0x1] ss:$0 sm:$0xff]  ;;  %v230_v43 = vld [vmem:[%s1653_s3 + $0x10] sm:$0xff]  ;;  %v231_v45 = vld [vmem:[%s1653_s3 + $0x18] sm:$0xff] }
   0x7   :  { %v228_v41 = vld [vmem:[%s1653_s3] sm:$0xff]  ;;  %v1173_v46 = vpack.c.bf16 %v231_v45, %v230_v43  ;;  %v316_v48 = vld [vmem:[%s1654_s4 + $0x8] sm:$0xff]  ;;  %v317_v49 = vld [vmem:[%s1654_s4 + $0x10] sm:$0xff] }
   0x8   :  { %1162 = vmatpush3.bf16.msra.mxu0 %v1161_v7  ;;  %1165 = vmatpush3.bf16.msra.mxu1 %v1164_v22  ;;  %v1170_v44 = vpack.c.bf16 %v229_v42, %v228_v41  ;;  %v315_v47 = vld [vmem:[%s1654_s4] sm:$0xff]  ;;  %v318_v51 = vld [vmem:[%s1654_s4 + $0x18] sm:$0xff]  ;;  %v320_v54 = vld [vmem:[%s1654_s4 + $0x28] sm:$0xff] }
   0x9   :  { %1169 = vmatprep.subr.bf16.mxu0 %v1292_v3  ;;  %1166 = vmatprep.subr.bf16.mxu1 %v1292_v3  ;;  %v1176_v50 = vpack.c.bf16 %v316_v48, %v315_v47  ;;  %v1179_v52 = vpack.c.bf16 %v318_v51, %v317_v49  ;;  %v319_v53 = vld [vmem:[%s1654_s4 + $0x20] sm:$0xff]  ;;  %v321_v61 = vld [vmem:[%s1654_s4 + $0x30] sm:$0xff]  ;;  %v322_v62 = vld [vmem:[%s1654_s4 + $0x38] sm:$0xff] }
   0xa   :  { %v1182_v55 = vpack.c.bf16 %v320_v54, %v319_v53  ;;  %v1185_v63 = vpack.c.bf16 %v322_v62, %v321_v61  ;;  %v323_v0 = vld [vmem:[%s1654_s4 + $0x40] sm:$0xff]  ;;  %v324_v1 = vld [vmem:[%s1654_s4 + $0x48] sm:$0xff]  ;;  %v325_v4 = vld [vmem:[%s1654_s4 + $0x50] sm:$0xff] }
   0xb   :  { %1030 = vmatmul.mubr.msk.f32.vlgmr.msra.gmra.mrb[0].mxu0 %vm43_vm1, %v33_v8  ;;  %v1188_v2 = vpack.c.bf16 %v324_v1, %v323_v0  ;;  %v326_v5 = vld [vmem:[%s1654_s4 + $0x58] sm:$0xff]  ;;  %v327_v8 = vld [vmem:[%s1654_s4 + $0x60] sm:$0xff] }
   0xc   :  { %1051 = vmatprep.mubr.msk.f32.mxu0 %vm1293_vm0, %v1294_v6  ;;  %1168 = vmatpush3.bf16.msra.mxu1 %v1167_v24  ;;  %v1191_v7 = vpack.c.bf16 %v326_v5, %v325_v4  ;;  %v925_v23 = vld [vmem:[%s1656_s6 + $0x3] ss:$0 sm:$0xff]  ;;  %v930_v45 = vld [vmem:[%s1656_s6 + $0x2] ss:$0 sm:$0xff] }
   0xd   :  { %1175 = vmatprep.subr.bf16.mxu1 %v1292_v3  ;;  %1171 = vmatpush3.bf16.msra.mxu0 %v1170_v44  ;;  %v938_v1 = vld [vmem:[%s1654_s4 + $0x80] sm:$0xff] }
   0xe   :  { %1172 = vmatprep.subr.bf16.mxu0 %v1292_v3 }
  0x11   :  { %1174 = vmatpush3.bf16.msra.mxu0 %v1173_v46 }
  0x12   :  { %1199 = vmatprep.subr.bf16.mxu0 %v1292_v3 }
  0xde   :  { %v113_v10 = vpop.f32.mrb[0].mxu0 }
  0xdf   :  { %v114_v11 = vadd.f32 %v919_v9, %v113_v10  ;;  %v1031_v12 = vpop.f32.mrb[1].mxu0  ;;  %v328_v9 = vld [vmem:[%s1654_s4 + $0x68] sm:$0xff] }
  0xe0   :  { %v1194_v10 = vpack.c.bf16 %v328_v9, %v327_v8  ;;  %v330_v12 = vld [vmem:[%s1654_s4 + $0x78] sm:$0xff]  ;;  %v940_v8 = vld [vmem:[%s1654_s4 + $0x90] sm:$0xff] }
  0xe1   :  { %v118_v13 = vsel %vm117_vm2, %v114_v11, 0.0  ;;  %v941_v9 = vld [vmem:[%s1654_s4 + $0x98] sm:$0xff] }
  0xe2   :  { %119 = vadd.xlane.f32.xlu0 %v118_v13 }
 0x16f   :  { %v120_v14 = vpop.xlane.xlu0 %119 }
 0x170   :  { %v122_v15 = vmul.f32 0.03125, %v120_v14  ;;  %v923_v14 = vld [vmem:[%s1657_s7] ss:$0 sm:$0xff] }
 0x172   :  { %v123_v16 = vsub.f32 %v114_v11, %v122_v15 }
 0x174   :  { %v124_v17 = vmul.f32 %v123_v16, %v123_v16 }
 0x176   :  { %v125_v18 = vsel %vm117_vm2, %v124_v17, 0.0 }
 0x177   :  { %126 = vadd.xlane.f32.xlu0 %v125_v18 }
 0x204   :  { %v127_v25 = vpop.xlane.xlu0 %126 }
 0x205   :  { %v128_v26 = vmul.f32 0.03125, %v127_v25 }
 0x207   :  { %v129_v27 = vadd.f32 1e-05, %v128_v26 }
 0x209   :  { %1254 = vrsqrt.f32 %v129_v27 }
 0x213   :  { %v1255_v28 = vpop.eup %1254 }
 0x214   :  { %v131_v29 = vmul.f32 %v1255_v28, %v123_v16 }
 0x216   :  { %1041 = vmatmul.mubr.msk.f32.vlgmr.msra.gmra.mrb[0].mxu1 %vm43_vm1, %v131_v29 }
 0x217   :  { %1086 = vmatprep.mubr.msk.f32.mxu1 %vm1293_vm0, %v1294_v6  ;;  %1177 = vmatpush3.bf16.msra.mxu1 %v1176_v50 }
 0x218   :  { %1178 = vmatprep.subr.bf16.mxu1 %v1292_v3 }
 0x21b   :  { %1180 = vmatpush3.bf16.msra.mxu1 %v1179_v52 }
 0x21c   :  { %1181 = vmatprep.subr.bf16.mxu1 %v1292_v3 }
 0x21f   :  { %1183 = vmatpush3.bf16.msra.mxu1 %v1182_v55 }
 0x220   :  { %1184 = vmatprep.subr.bf16.mxu1 %v1292_v3 }
 0x223   :  { %1186 = vmatpush3.bf16.msra.mxu1 %v1185_v63 }
 0x224   :  { %1187 = vmatprep.subr.bf16.mxu1 %v1292_v3 }
 0x227   :  { %1189 = vmatpush3.bf16.msra.mxu1 %v1188_v2  ;;  %v939_v2 = vld [vmem:[%s1654_s4 + $0x88] sm:$0xff] }
 0x228   :  { %1190 = vmatprep.subr.bf16.mxu1 %v1292_v3  ;;  %v1212_v5 = vpack.c.bf16 %v939_v2, %v938_v1  ;;  %v716_v1 = vld [vmem:[%s1655_s5 + $0x28] sm:$0xff] }
 0x22b   :  { %1192 = vmatpush3.bf16.msra.mxu1 %v1191_v7 }
 0x22c   :  { %1193 = vmatprep.subr.bf16.mxu1 %v1292_v3 }
 0x22f   :  { %1195 = vmatpush3.bf16.msra.mxu1 %v1194_v10  ;;  %v1215_v10 = vpack.c.bf16 %v941_v9, %v940_v8  ;;  %v722_v8 = vld [vmem:[%s1655_s5 + $0x58] sm:$0xff] }
 0x230   :  { %1196 = vmatprep.subr.bf16.mxu1 %v1292_v3 }
 0x2e9   :  { %v210_v31 = vpop.f32.mrb[0].mxu1 }
 0x2ea   :  { %v211_v32 = vadd.f32 %v921_v30, %v210_v31  ;;  %v1042_v33 = vpop.f32.mrb[1].mxu1 }
 0x2ec   :  { %v1398_v34 = vadd.f32 %v211_v32, %v114_v11  ;;  %v329_v11 = vld [vmem:[%s1654_s4 + $0x70] sm:$0xff] }
 0x2ed   :  { %v1197_v13 = vpack.c.bf16 %v330_v12, %v329_v11  ;;  %v942_v11 = vld [vmem:[%s1654_s4 + $0xa0] sm:$0xff]  ;;  %v943_v12 = vld [vmem:[%s1654_s4 + $0xa8] sm:$0xff] }
 0x2ee   :  { %v215_v35 = vsel %vm117_vm2, %v1398_v34, 0.0 }
 0x2ef   :  { %216 = vadd.xlane.f32.xlu1 %v215_v35  ;;  %1198 = vmatpush3.bf16.msra.mxu1 %v1197_v13  ;;  %v926_v35 = vld [vmem:[%s1652_s2 + $0x20] sm:$0xff]  ;;  %v1218_v13 = vpack.c.bf16 %v943_v12, %v942_v11 }
 0x37c   :  { %v217_v36 = vpop.xlane.xlu1 %216 }
 0x37d   :  { %v218_v37 = vmul.f32 0.03125, %v217_v36  ;;  %v927_v36 = vld [vmem:[%s1652_s2 + $0x28] sm:$0xff] }
 0x37f   :  { %v219_v38 = vsub.f32 %v1398_v34, %v218_v37  ;;  %v1200_v37 = vpack.c.bf16 %v927_v36, %v926_v35 }
 0x381   :  { %v220_v39 = vmul.f32 %v219_v38, %v219_v38 }
 0x383   :  { %v221_v40 = vsel %vm117_vm2, %v220_v39, 0.0 }
 0x384   :  { %222 = vadd.xlane.f32.xlu1 %v221_v40 }
 0x411   :  { %v223_v56 = vpop.xlane.xlu1 %222 }
 0x412   :  { %v224_v57 = vmul.f32 0.03125, %v223_v56  ;;  %v932_v56 = vld [vmem:[%s1653_s3 + $0x20] sm:$0xff] }
 0x414   :  { %v225_v58 = vadd.f32 1e-05, %v224_v57  ;;  %v933_v57 = vld [vmem:[%s1653_s3 + $0x28] sm:$0xff] }
 0x416   :  { %1256 = vrsqrt.f32 %v225_v58  ;;  %v934_v58 = vld [vmem:[%s1653_s3 + $0x30] sm:$0xff] }
 0x420   :  { %v1257_v59 = vpop.eup %1256 }
 0x421   :  { %v227_v60 = vmul.f32 %v1257_v59, %v219_v38  ;;  %v929_v38 = vld [vmem:[%s1652_s2 + $0x38] sm:$0xff]  ;;  %v1206_v59 = vpack.c.bf16 %v933_v57, %v932_v56  ;;  %v721_v56 = vld [vmem:[%s1655_s5 + $0x50] sm:$0xff] }
 0x423   :  { %1052 = vmatmul.mubr.msk.f32.vlgmr.msra.gmra.mrb[2].mxu0 %vm43_vm1, %v227_v60  ;;  %v935_v60 = vld [vmem:[%s1653_s3 + $0x38] sm:$0xff] }
 0x424   :  { %1097 = vmatprep.mubr.msk.f32.mxu0 %vm1293_vm0, %v1294_v6  ;;  %1201 = vmatpush3.bf16.msra.mxu0 %v1200_v37  ;;  %v1209_v61 = vpack.c.bf16 %v935_v60, %v934_v58  ;;  %v717_v58 = vld [vmem:[%s1655_s5 + $0x30] sm:$0xff] }
 0x425   :  { %1202 = vmatprep.subr.bf16.mxu0 %v1292_v3 }
 0x4f6   :  { %v306_v15 = vpop.f32.mrb[2].mxu0 }
 0x4f7   :  { %v307_v16 = vadd.f32 %v923_v14, %v306_v15  ;;  %v1053_v17 = vpop.f32.mrb[3].mxu0  ;;  %v944_v14 = vld [vmem:[%s1654_s4 + $0xb0] sm:$0xff]  ;;  %v945_v15 = vld [vmem:[%s1654_s4 + $0xb8] sm:$0xff] }
 0x4f8   :  { %v946_v17 = vld [vmem:[%s1654_s4 + $0xc0] sm:$0xff] }
 0x4f9   :  { %v311_v18 = vmul.f32 0.70710677, %v307_v16  ;;  %v310_v20 = vmul.f32 0.5, %v307_v16  ;;  %v1221_v16 = vpack.c.bf16 %v945_v15, %v944_v14 }
 0x4fb   :  { %1258 = verf.f32 %v311_v18  ;;  %v947_v18 = vld [vmem:[%s1654_s4 + $0xc8] sm:$0xff] }
 0x505   :  { %v1259_v19 = vpop.eup %1258 }
 0x506   :  { %v313_v21 = vadd.f32 1.0, %v1259_v19  ;;  %v1224_v19 = vpack.c.bf16 %v947_v18, %v946_v17  ;;  %v1295_v17 = vmov 1983009808  }
 0x507   :  { %v889_v18 = vunpack.c.l.s4 %v1295_v17 }
 0x508   :  { %v314_v22 = vmul.f32 %v313_v21, %v310_v20  ;;  %v948_v20 = vld [vmem:[%s1654_s4 + $0xd0] sm:$0xff]  ;;  %v949_v21 = vld [vmem:[%s1654_s4 + $0xd8] sm:$0xff] }
 0x50a   :  { %1087 = vmatmul.mubr.f32.vlgmr.msra.gmra.mrb[2].mxu1 %v314_v22  ;;  %v1227_v22 = vpack.c.bf16 %v949_v21, %v948_v20 }
 0x50b   :  { %807 = vmatprep.mubr.f32.mxu1 %v1294_v6 }
 0x5dd   :  { %v402_v24 = vpop.f32.mrb[2].mxu1 }
 0x5de   :  { %v403_v25 = vadd.f32 %v925_v23, %v402_v24  ;;  %v1088_v26 = vpop.f32.mrb[3].mxu1  ;;  %v950_v23 = vld [vmem:[%s1654_s4 + $0xe0] sm:$0xff]  ;;  %v951_v24 = vld [vmem:[%s1654_s4 + $0xe8] sm:$0xff] }
 0x5df   :  { %v952_v26 = vld [vmem:[%s1654_s4 + $0xf0] sm:$0xff] }
 0x5e0   :  { %v406_v27 = vadd.f32 %v403_v25, %v1398_v34  ;;  %v928_v34 = vld [vmem:[%s1652_s2 + $0x30] sm:$0xff]  ;;  %v1230_v25 = vpack.c.bf16 %v951_v24, %v950_v23 }
 0x5e1   :  { %v1203_v39 = vpack.c.bf16 %v929_v38, %v928_v34  ;;  %v954_v38 = vld [vmem:[%s1656_s6 + $0x4] ss:$0 sm:$0xff] }
 0x5e2   :  { %v407_v28 = vsel %vm117_vm2, %v406_v27, 0.0 }
 0x5e3   :  { %408 = vadd.xlane.f32.xlu0 %v407_v28  ;;  %1204 = vmatpush3.bf16.msra.mxu0 %v1203_v39 }
 0x5e4   :  { %1205 = vmatprep.subr.bf16.mxu0 %v1292_v3 }
 0x670   :  { %v409_v29 = vpop.xlane.xlu0 %408 }
 0x671   :  { %v410_v30 = vmul.f32 0.03125, %v409_v29  ;;  %v936_v29 = vld [vmem:[%s1657_s7 + $0x1] ss:$0 sm:$0xff] }
 0x673   :  { %v411_v31 = vsub.f32 %v406_v27, %v410_v30 }
 0x675   :  { %v412_v32 = vmul.f32 %v411_v31, %v411_v31 }
 0x677   :  { %v413_v33 = vsel %vm117_vm2, %v412_v32, 0.0 }
 0x678   :  { %414 = vadd.xlane.f32.xlu1 %v413_v33 }
 0x705   :  { %v415_v40 = vpop.xlane.xlu1 %414 }
 0x706   :  { %v416_v41 = vmul.f32 0.03125, %v415_v40 }
 0x708   :  { %v417_v42 = vadd.f32 1e-05, %v416_v41 }
 0x70a   :  { %1260 = vrsqrt.f32 %v417_v42 }
 0x714   :  { %v1261_v43 = vpop.eup %1260 }
 0x715   :  { %v419_v44 = vmul.f32 %v1261_v43, %v411_v31 }
 0x717   :  { %1098 = vmatmul.mubr.msk.f32.vlgmr.msra.gmra.mrb[4].mxu0 %vm43_vm1, %v419_v44 }
 0x718   :  { %1108 = vmatprep.mubr.msk.f32.mxu0 %vm1293_vm0, %v1294_v6  ;;  %1207 = vmatpush3.bf16.msra.mxu0 %v1206_v59  ;;  %v720_v59 = vld [vmem:[%s1655_s5 + $0x48] sm:$0xff] }
 0x719   :  { %1208 = vmatprep.subr.bf16.mxu0 %v1292_v3  ;;  %v1241_v60 = vpack.c.bf16 %v720_v59, %v717_v58 }
 0x71c   :  { %1210 = vmatpush3.bf16.msra.mxu0 %v1209_v61 }
 0x71d   :  { %1211 = vmatprep.subr.bf16.mxu0 %v1292_v3 }
 0x7ea   :  { %v499_v46 = vpop.f32.mrb[4].mxu0 }
 0x7eb   :  { %v500_v47 = vadd.f32 %v930_v45, %v499_v46  ;;  %v1099_v48 = vpop.f32.mrb[5].mxu0 }
 0x7ed   :  { %v1506_v49 = vadd.f32 %v500_v47, %v406_v27  ;;  %v953_v27 = vld [vmem:[%s1654_s4 + $0xf8] sm:$0xff] }
 0x7ee   :  { %v1233_v28 = vpack.c.bf16 %v953_v27, %v952_v26 }
 0x7ef   :  { %v504_v50 = vsel %vm117_vm2, %v1506_v49, 0.0 }
 0x7f0   :  { %505 = vadd.xlane.f32.xlu0 %v504_v50  ;;  %v712_v50 = vld [vmem:[%s1655_s5 + $0x8] sm:$0xff] }
 0x87d   :  { %v506_v51 = vpop.xlane.xlu0 %505 }
 0x87e   :  { %v507_v52 = vmul.f32 0.03125, %v506_v51  ;;  %v715_v51 = vld [vmem:[%s1655_s5 + $0x20] sm:$0xff] }
 0x880   :  { %v508_v53 = vsub.f32 %v1506_v49, %v507_v52  ;;  %v1235_v52 = vpack.c.bf16 %v715_v51, %v712_v50 }
 0x882   :  { %v509_v54 = vmul.f32 %v508_v53, %v508_v53  ;;  %1236 = vmatprep.subr.bf16.mxu1 %v1235_v52 }
 0x884   :  { %v510_v55 = vsel %vm117_vm2, %v509_v54, 0.0 }
 0x885   :  { %511 = vadd.xlane.f32.xlu1 %v510_v55  ;;  %v718_v55 = vld [vmem:[%s1655_s5 + $0x38] sm:$0xff] }
 0x886   :  { %v1239_v57 = vpack.c.bf16 %v721_v56, %v718_v55 }
 0x912   :  { %v512_v62 = vpop.xlane.xlu1 %511 }
 0x913   :  { %v513_v63 = vmul.f32 0.03125, %v512_v62 }
 0x915   :  { %v514_v0 = vadd.f32 1e-05, %v513_v63 }
 0x917   :  { %1262 = vrsqrt.f32 %v514_v0  ;;  %v713_v0 = vld [vmem:[%s1655_s5 + $0x10] sm:$0xff] }
 0x921   :  { %v1263_v4 = vpop.eup %1262 }
 0x922   :  { %v516_v7 = vmul.f32 %v1263_v4, %v508_v53  ;;  %v714_v53 = vld [vmem:[%s1655_s5 + $0x18] sm:$0xff]  ;;  %v1244_v4 = vpack.c.bf16 %v716_v1, %v713_v0 }
 0x924   :  { %1109 = vmatmul.mubr.msk.f32.vlgmr.msra.gmra.mrb[6].mxu0 %vm43_vm1, %v516_v7  ;;  %v719_v7 = vld [vmem:[%s1655_s5 + $0x40] sm:$0xff] }
 0x925   :  { %1213 = vmatpush3.bf16.msra.mxu0 %v1212_v5  ;;  %1143 = vmatprep.mubr.msk.f32.mxu0 %vm1293_vm0, %v1294_v6  ;;  %v1247_v9 = vpack.c.bf16 %v722_v8, %v719_v7 }
 0x926   :  { %1214 = vmatprep.subr.bf16.mxu0 %v1292_v3 }
 0x929   :  { %1216 = vmatpush3.bf16.msra.mxu0 %v1215_v10  ;;  %v725_v10 = vlaneseq }
 0x92a   :  { %1217 = vmatprep.subr.bf16.mxu0 %v1292_v3 }
 0x92b   :  { %v726_v11 = vshrl.u32 %v725_v10, 7 }
 0x92d   :  { %1219 = vmatpush3.bf16.msra.mxu0 %v1218_v13  ;;  %v727_v12 = vsub.s32 0, %v726_v11  ;;  %v723_v13 = vld [vmem:[%s1658_s8] sm:$0x7]  ;;  %v731_v14 = vsub.s32 1, %v726_v11  ;;  %v735_v21 = vsub.s32 2, %v726_v11 }
 0x92e   :  { %1220 = vmatprep.subr.bf16.mxu0 %v1292_v3 }
 0x92f   :  { %v728_v15 = vrot.slane %v723_v13, %v727_v12  ;;  %v736_v24 = vrot.slane %v723_v13, %v735_v21 }
 0x931   :  { %1222 = vmatpush3.bf16.msra.mxu0 %v1221_v16  ;;  %v732_v16 = vrot.slane %v723_v13, %v731_v14 }
 0x932   :  { %1223 = vmatprep.subr.bf16.mxu0 %v1292_v3 }
 0x935   :  { %1225 = vmatpush3.bf16.msra.mxu0 %v1224_v19 }
 0x936   :  { %1226 = vmatprep.subr.bf16.mxu0 %v1292_v3 }
 0x939   :  { %1228 = vmatpush3.bf16.msra.mxu0 %v1227_v22  ;;  %v890_v22 = vunpack.c.0.s8 %v889_v18 }
 0x93a   :  { %1229 = vmatprep.subr.bf16.mxu0 %v1292_v3 }
 0x93d   :  { %1231 = vmatpush3.bf16.msra.mxu0 %v1230_v25  ;;  %v893_v25 = vsub.s32 %v890_v22, %v726_v11 }
 0x93e   :  { %1232 = vmatprep.subr.bf16.mxu0 %v1292_v3 }
 0x941   :  { %1234 = vmatpush3.bf16.msra.mxu0 %v1233_v28 }
 0x9f7   :  { %v596_v30 = vpop.f32.mrb[6].mxu0 }
 0x9f8   :  { %v597_v31 = vadd.f32 %v936_v29, %v596_v30  ;;  %v1110_v32 = vpop.f32.mrb[7].mxu0 }
 0x9fa   :  { %v601_v33 = vmul.f32 0.70710677, %v597_v31  ;;  %v600_v36 = vmul.f32 0.5, %v597_v31 }
 0x9fc   :  { %1264 = verf.f32 %v601_v33 }
 0xa06   :  { %v1265_v35 = vpop.eup %1264 }
 0xa07   :  { %v603_v34 = vadd.f32 1.0, %v1265_v35 }
 0xa09   :  { %v604_v37 = vmul.f32 %v603_v34, %v600_v36 }
 0xa0b   :  { %1144 = vmatmul.mubr.f32.vlgmr.msra.gmra.mrb[8].mxu0 %v604_v37 }
 0xade   :  { %v693_v39 = vpop.f32.mrb[8].mxu0 }
 0xadf   :  { %v694_v40 = vadd.f32 %v954_v38, %v693_v39  ;;  %v1145_v41 = vpop.f32.mrb[9].mxu0 }
 0xae1   :  { %v697_v42 = vadd.f32 %v694_v40, %v1506_v49  ;;  %v711_v49 = vld [vmem:[%s1655_s5] sm:$0xff]  ;;  %s1296_s5 = smov [#allocation2]  }
 0xae2   :  { %v1237_v54 = vpack.c.bf16 %v714_v53, %v711_v49  ;;  %s911_s29 = sshll.u32 %s1296_s5, 4  ;;  %s912_s29 = int_to_ptr.vmem [resolvable:$true] %s911_s29 }
 0xae3   :  { %v698_v43 = vsel %vm117_vm2, %v697_v42, 0.0  ;;  %s1268_s8 = scalar_lea.vmem %s912_s29, 96  ;;  %p1273_p1 = scmp.lt.s32.totalorder %s912_s29, %s912_s29 }
 0xae4   :  { %699 = vadd.xlane.f32.xlu0 %v698_v43  ;;  %1238 = vmatpush1.bf16.msra.mxu1 %v1237_v54  ;;  %p1269_p0 = scmp.ne.s32.totalorder %s912_s29, %s1268_s8  ;;  %p1274_p2 = scmp.lt.s32.totalorder %s1268_s8, %s1268_s8 }
 0xae5   :  { %1240 = vmatprep.subr.bf16.mxu1 %v1239_v57 }
 0xae6   :  { %p1275_p3 = por %p1274_p2, %p1273_p1 }
 0xae8   :  { %1242 = vmatpush1.bf16.msra.mxu1 %v1241_v60  ;;  %p1276_p4 = pnand %p1275_p3, %p1269_p0 }
 0xae9   :  { %1243 = vmatprep.subr.bf16.mxu1 %v1292_v3 }
 0xb71   :  { %v700_v44 = vpop.xlane.xlu0 %699 }
 0xb72   :  { %v701_v45 = vmul.f32 0.03125, %v700_v44 }
 0xb74   :  { %v702_v46 = vsub.f32 %v697_v42, %v701_v45 }
 0xb76   :  { %v703_v47 = vmul.f32 %v702_v46, %v702_v46 }
 0xb78   :  { %v704_v48 = vsel %vm117_vm2, %v703_v47, 0.0 }
 0xb79   :  { %705 = vadd.xlane.f32.xlu1 %v704_v48 }
 0xc06   :  { %v706_v61 = vpop.xlane.xlu1 %705 }
 0xc07   :  { %v707_v62 = vmul.f32 0.03125, %v706_v61 }
 0xc09   :  { %v708_v63 = vadd.f32 1e-05, %v707_v62 }
 0xc0b   :  { %1266 = vrsqrt.f32 %v708_v63 }
 0xc15   :  { %v1267_v2 = vpop.eup %1266 }
 0xc16   :  { %v710_v5 = vmul.f32 %v1267_v2, %v702_v46 }
 0xc18   :  { %955 = vmatmul.mubr.msk.f32.vlgmr.msra.gmra.mrb[4].mxu1 %vm43_vm1, %v710_v5 }
 0xc19   :  { %1245 = vmatpush3.bf16.msra.mxu1 %v1244_v4  ;;  %1154 = vmatprep.mubr.msk.f32.mxu1 %vm1293_vm0, %v1294_v6 }
 0xc1a   :  { %1246 = vmatprep.subr.bf16.mxu1 %v1292_v3 }
 0xc1d   :  { %1248 = vmatpush3.bf16.msra.mxu1 %v1247_v9 }
 0xc20   :  { %1155 = vmatmul.mubr.msk.f32.vlgmr.msra.gmra.mrb[6].mxu1 %vm43_vm1, %v710_v5 }
 0xceb   :  { %v809_v19 = vpop.f32.mrb[4].mxu1 }
 0xcec   :  { %v810_v20 = vadd.f32 %v809_v19, %v728_v15  ;;  %v811_v6 = vpop.f32.mrb[5].mxu1 }
 0xced   :  { %v812_v3 = vadd.f32 %v811_v6, %v732_v16 }
 0xcef   :  { %v887_v23 = vcombine.low %v810_v20, %v812_v3 }
 0xcf1   :  { %v894_v30 = vrot.slane %v887_v23, %v893_v25 }
 0xcf3   :  { %v880_v26 = vpop.f32.mrb[6].mxu1 }
 0xcf4   :  { %v881_v27 = vadd.f32 %v880_v26, %v736_v24  ;;  %v1156_v28 = vpop.f32.mrb[7].mxu1 }
 0xcf6   :  { %v901_v29 = vrot.slane %v881_v27, %v893_v25 }
 0xcf8   :  { %v902_v31 = vcombine.low %v894_v30, %v901_v29 }
 0xcfa   :  { %904 = vst [vmem:[#allocation2] sm:$0x3f] %v902_v31 }
 0xcfb   :  { %1279 = shalt.err (!%p1276_p4)
}
 0xcfc   :  { %s1280_s7 = scalar_lea.hbm %s1659_s9, 96 }
 0xcfd   :  { %p1281_p5 = scmp.ne.s32.totalorder %s1659_s9, %s1280_s7  ;;  %p1284_p6 = scmp.lt.u32.totalorder %s1280_s7, %s1659_s9 }
 0xcff   :  { %p1286_p7 = pnand %p1284_p6, %p1281_p5 }
 0xd01   :  { %1289 = shalt.err (!%p1286_p7)
}
 0xd02   :  { %914 = dma.vmem_to_hbm [thread:$0]  %s912_s29, 96, %s1659_s9, [#allocation3]  }
 0xd03   :  { %1290 = dma.done.wait [#allocation3], 96  }
 0xd04   :  { %1291 = vsyncadd [#allocation3], 4294967200 }
 0xd05   :  { %918 = vsyncpa [#allocation3], 1 }

</bundles_post_ra>
